<compile_context>
chip_gen: v6e
topology: v6e:2x2x1
jax: 0.10.0
libtpu: 0.0.40
codegen_flags: <defaults>
</compile_context>

<pallas_src>
import functools

import jax
import jax.numpy as jnp
from jax.experimental import pallas as pl
from jax.experimental.pallas import tpu as pltpu

LANES = 128               # minimum unmasked lane width
BLOCK_ROWS_TARGET = 4096  # 4096 x 128 x 4B = 2 MiB f32 per block (multiple of 32,
                          # so bf16/int8 packed tiles stay unmasked; 4 double
                          # buffers = 8 MiB, under v5e's 16 MiB scoped-VMEM default)


def _round_up(x, m):
    return ((x + m - 1) // m) * m


def _gsmelu_kernel(x_ref, o_ref, *, slope, neg_slope, alpha, beta, t, quad_coef):
    x = x_ref[...].astype(jnp.float32)

    left = neg_slope * x + t                              # x <= alpha - beta
    right = slope * (x - alpha) + (t + neg_slope * alpha)  # x >= alpha + beta
    u = x - (alpha - beta)
    quad = left + quad_coef * (u * u)                      # transition region

    y = jnp.where(x <= (alpha - beta), left,
                  jnp.where(x >= (alpha + beta), right, quad))
    o_ref[...] = y.astype(o_ref.dtype)


def _choose_block_rows(rows):
    """Pick a sublane block size: big enough to hide per-step overhead, small
    enough for scoped VMEM on all generations, and (when the tensor is large)
    at least ~8 blocks so v7x megacore sharding has work for both cores."""
    if rows <= 8 * 32:
        # Tiny tensor: single full-extent block (always a legal block shape).
        return rows
    return min(BLOCK_ROWS_TARGET, _round_up(pl.cdiv(rows, 8), 32))


def gsmelu_pallas(x, slope=1.0, negative_slope=0.01, alpha=0.1, beta=0.1,
                  delta_t=0.0):
    """Elementwise GSmeLU via Pallas. Works on any shape / float dtype."""
    if beta <= 0.0:
        raise ValueError("GSmeLU requires beta > 0 (quadratic half-width).")

    t = -negative_slope * alpha + delta_t
    quad_coef = (slope - negative_slope) / (4.0 * beta)   # hoisted: no in-kernel divide

    orig_shape = x.shape
    orig_dtype = x.dtype

    flat = x.reshape(-1)
    n = flat.shape[0]

    # Pad only to a multiple of LANES (<= 127 elements); fast path skips it.
    pad = (-n) % LANES
    if pad:
        flat = jnp.pad(flat, (0, pad))
    x2 = flat.reshape(-1, LANES)
    rows = x2.shape[0]

    block_rows = _choose_block_rows(rows)
    grid = (pl.cdiv(rows, block_rows),)   # partial last block handled by Pallas

    kernel = functools.partial(
        _gsmelu_kernel,
        slope=float(slope),
        neg_slope=float(negative_slope),
        alpha=float(alpha),
        beta=float(beta),
        t=float(t),
        quad_coef=float(quad_coef),
    )

    itemsize = jnp.dtype(orig_dtype).itemsize
    n_elems = rows * LANES
    cost = pl.CostEstimate(
        flops=8 * n_elems,
        transcendentals=0,
        bytes_accessed=2 * n_elems * itemsize,
    )

    out2 = pl.pallas_call(
        kernel,
        out_shape=jax.ShapeDtypeStruct((rows, LANES), orig_dtype),
        grid=grid,
        in_specs=[pl.BlockSpec((block_rows, LANES), lambda i: (i, 0))],
        out_specs=pl.BlockSpec((block_rows, LANES), lambda i: (i, 0)),
        compiler_params=pltpu.CompilerParams(
            dimension_semantics=("parallel",)),
        cost_estimate=cost,
    )(x2)

    if pad:
        return out2.reshape(-1)[:n].reshape(orig_shape)
    return out2.reshape(orig_shape)


def gsmelu_ref(x, slope=1.0, negative_slope=0.01, alpha=0.1, beta=0.1,
               delta_t=0.0):
    """Pure-jnp reference (same assumed math) for correctness checking."""
    t = -negative_slope * alpha + delta_t
    xf = x.astype(jnp.float32)
    left = negative_slope * xf + t
    right = slope * (xf - alpha) + (t + negative_slope * alpha)
    u = xf - alpha + beta
    quad = (slope - negative_slope) * (u * u) / (4.0 * beta) + negative_slope * xf + t
    y = jnp.where(xf <= (alpha - beta), left,
                  jnp.where(xf >= (alpha + beta), right, quad))
    return y.astype(x.dtype)


class GSmeLU:
    """JAX/Pallas mirror of the PyTorch GSmeLU module (forward only,
    no learnable params)."""

    def __init__(self, slope=1.0, negative_slope=0.01, alpha=0.1, beta=0.1,
                 delta_t=0.0):
        self.slope = slope
        self.neg_slope = negative_slope
        self.alpha = alpha
        self.beta = beta
        self.delta_t = delta_t

    def __call__(self, x):
        return gsmelu_pallas(x, slope=self.slope,
                             negative_slope=self.neg_slope,
                             alpha=self.alpha, beta=self.beta,
                             delta_t=self.delta_t)


if __name__ == "__main__":
    key = jax.random.PRNGKey(0)
    # NCHW input, small shape; values scaled so the quadratic region is hit.
    x = jax.random.normal(key, (2, 4, 16, 16), dtype=jnp.float32) * 0.5

    mod = GSmeLU()  # defaults: slope=1.0, neg_slope=0.01, alpha=0.1, beta=0.1
    y = mod(x)
    y = jax.block_until_ready(y)

    y_ref = gsmelu_ref(x)
    assert y.shape == x.shape and y.dtype == x.dtype
    assert bool(jnp.allclose(y, y_ref, atol=1e-5, rtol=1e-5)), "mismatch vs reference"

    # Also exercise a larger, multi-block, megacore-friendly path and a
    # non-multiple-of-128 ragged path.
    x_big = jax.random.normal(jax.random.PRNGKey(1), (8, 64, 64, 64),
                              dtype=jnp.float32)
    y_big = jax.block_until_ready(mod(x_big))
    assert bool(jnp.allclose(y_big, gsmelu_ref(x_big), atol=1e-5, rtol=1e-5))

    x_ragged = jax.random.normal(jax.random.PRNGKey(2), (3, 5, 7),
                                 dtype=jnp.float32)
    y_ragged = jax.block_until_ready(mod(x_ragged))
    assert bool(jnp.allclose(y_ragged, gsmelu_ref(x_ragged), atol=1e-5, rtol=1e-5))

    print("KERNEL_OK")
</pallas_src>

<mosaic_0001>
module attributes {stable_mosaic.version = 11 : i64} {
  func.func @_gsmelu_kernel(%arg0: i32, %arg1: memref<16x128xf32, #tpu.memory_space<vmem>>, %arg2: memref<16x128xf32, #tpu.memory_space<vmem>>) attributes {dimension_semantics = [#tpu.dimension_semantics<parallel>], iteration_bounds = array<i64: 1>, scalar_prefetch = 0 : i64, scratch_operands = 0 : i64, tpu.core_type = #tpu.core_type<tc>, window_params = [{transform_indices = @transform_0, window_bounds = array<i64: 16, 128>}, {transform_indices = @transform_1, window_bounds = array<i64: 16, 128>}]} {
    %c0 = arith.constant 0 : index
    %c0_0 = arith.constant 0 : index
    %0 = vector.load %arg1[%c0, %c0_0] : memref<16x128xf32, #tpu.memory_space<vmem>>, vector<16x128xf32>
    %cst = arith.constant 0.00999999977 : f32
    %1 = vector.broadcast %cst : f32 to vector<16x128xf32>
    %2 = arith.mulf %1, %0 : vector<16x128xf32>
    %cst_1 = arith.constant -1.000000e-03 : f32
    %3 = vector.broadcast %cst_1 : f32 to vector<16x128xf32>
    %4 = arith.addf %2, %3 : vector<16x128xf32>
    %cst_2 = arith.constant 1.000000e-01 : f32
    %5 = vector.broadcast %cst_2 : f32 to vector<16x128xf32>
    %6 = arith.subf %0, %5 : vector<16x128xf32>
    %cst_3 = arith.constant 1.000000e+00 : f32
    %7 = vector.broadcast %cst_3 : f32 to vector<16x128xf32>
    %8 = arith.mulf %7, %6 : vector<16x128xf32>
    %cst_4 = arith.constant 0.000000e+00 : f32
    %9 = vector.broadcast %cst_4 : f32 to vector<16x128xf32>
    %10 = arith.addf %8, %9 : vector<16x128xf32>
    %cst_5 = arith.constant 0.000000e+00 : f32
    %11 = vector.broadcast %cst_5 : f32 to vector<16x128xf32>
    %12 = arith.subf %0, %11 : vector<16x128xf32>
    %13 = arith.mulf %12, %12 : vector<16x128xf32>
    %cst_6 = arith.constant 2.475000e+00 : f32
    %14 = vector.broadcast %cst_6 : f32 to vector<16x128xf32>
    %15 = arith.mulf %14, %13 : vector<16x128xf32>
    %16 = arith.addf %4, %15 : vector<16x128xf32>
    %cst_7 = arith.constant 0.000000e+00 : f32
    %17 = vector.broadcast %cst_7 : f32 to vector<16x128xf32>
    %18 = arith.cmpf ole, %0, %17 : vector<16x128xf32>
    %cst_8 = arith.constant 2.000000e-01 : f32
    %19 = vector.broadcast %cst_8 : f32 to vector<16x128xf32>
    %20 = arith.cmpf oge, %0, %19 : vector<16x128xf32>
    %21 = arith.select %20, %10, %16 : vector<16x128xi1>, vector<16x128xf32>
    %22 = arith.select %18, %4, %21 : vector<16x128xi1>, vector<16x128xf32>
    %c0_9 = arith.constant 0 : index
    %c0_10 = arith.constant 0 : index
    %23 = vector.load %arg2[%c0_9, %c0_10] : memref<16x128xf32, #tpu.memory_space<vmem>>, vector<16x128xf32>
    tpu.vector_store %arg2[%c0_9, %c0_10], %22 {strides = array<i32>} : memref<16x128xf32, #tpu.memory_space<vmem>>, vector<16x128xf32>,
    return
  }
  func.func @transform_0(%arg0: i32) -> (i32, i32) {
    %c0_i32 = arith.constant 0 : i32
    %c0_i32_0 = arith.constant 0 : i32
    return %arg0, %c0_i32 : i32, i32
  }
  func.func @transform_1(%arg0: i32) -> (i32, i32) {
    %c0_i32 = arith.constant 0 : i32
    %c0_i32_0 = arith.constant 0 : i32
    return %arg0, %c0_i32 : i32, i32
  }
}

</mosaic_0001>

<bundles_post_ra>
// kernel: tpu_custom_call.1
= control target key start
LH: loop header
LB: loop body
LE: loop exit
PB: predicated region body
PF: predicated region fallthrough
CT: control target
= control target key end

     0   :  { %6 = vsyncpa [#allocation3], 0  ;;  %s142_s0 = inlined_call_operand.hbm [shape: f32[16,128], index: 0, kind: input, shape index: {}]   ;;  %s143_s1 = inlined_call_operand.hbm [shape: f32[16,128], index: 1, kind: output, shape index: {}]  }
   0x1   :  { %7 = vsyncpa [#allocation4], 0  ;;  %s116_s6 = smov [#allocation2]  }
   0x2   :  { %s13_s7 = sshll.u32 %s116_s6, 4  ;;  %s14_s7 = int_to_ptr.vmem [resolvable:$true] %s13_s7 }
   0x3   :  { %s80_s8 = scalar_lea.vmem %s14_s7, 256  ;;  %p85_p1 = scmp.lt.s32.totalorder %s14_s7, %s14_s7 }
   0x4   :  { %p81_p0 = scmp.ne.s32.totalorder %s14_s7, %s80_s8  ;;  %p86_p2 = scmp.lt.s32.totalorder %s80_s8, %s80_s8 }
   0x6   :  { %p87_p3 = por %p86_p2, %p85_p1 }
   0x8   :  { %p88_p4 = pnand %p87_p3, %p81_p0 }
   0xa   :  { %91 = shalt.err (!%p88_p4)
}
   0xb   :  { %s117_s9 = smov 128   ;;  %s118_s10 = smov 8  }
   0xc   :  { %19 = dma.hbm_to_vmem [thread:$0]  %s142_s0, 256, %s14_s7, [#allocation3], %s117_s9, %s117_s9, %s118_s10  }
   0xd   :  { %112 = dma.done.wait [#allocation3], 256  }
   0xe   :  { %113 = vsyncadd [#allocation3], 4294967040  ;;  %v23_v0 = vld [vmem:[#allocation2] sm:$0xff]  ;;  %v24_v1 = vld [vmem:[#allocation2 + $0x8] sm:$0xff]  ;;  %s119_s13 = smov [#allocation5]  }
   0xf   :  { %v25_v2 = vmul.f32 0.01, %v23_v0  ;;  %v33_v3 = vmul.f32 %v23_v0, %v23_v0  ;;  %v66_v4 = vadd.f32 -0.1, %v23_v0  ;;  %v26_v5 = vmul.f32 0.01, %v24_v1 }
  0x10   :  { %v34_v6 = vmul.f32 %v24_v1, %v24_v1  ;;  %vm41_vm0 = vcmp.ge.f32.partialorder %v23_v0, 0.2  ;;  %v67_v10 = vadd.f32 -0.1, %v24_v1  ;;  %vm39_vm1 = vcmp.le.f32.partialorder %v23_v0, 0.0  ;;  %s54_s0 = sshll.u32 %s119_s13, 4  ;;  %s55_s0 = int_to_ptr.vmem [resolvable:$true] %s54_s0 }
  0x11   :  { %v27_v7 = vadd.f32 -0.001, %v25_v2  ;;  %v35_v8 = vmul.f32 2.475, %v33_v3  ;;  %v28_v9 = vadd.f32 -0.001, %v26_v5  ;;  %p97_p6 = scmp.lt.s32.totalorder %s55_s0, %s55_s0 }
  0x12   :  { %v36_v11 = vmul.f32 2.475, %v34_v6  ;;  %vm42_vm2 = vcmp.ge.f32.partialorder %v24_v1, 0.2  ;;  %vm40_vm3 = vcmp.le.f32.partialorder %v24_v1, 0.0  ;;  %s92_s14 = scalar_lea.vmem %s55_s0, 256 }
  0x13   :  { %v37_v12 = vadd.f32 %v35_v8, %v27_v7  ;;  %p93_p5 = scmp.ne.s32.totalorder %s55_s0, %s92_s14  ;;  %p98_p7 = scmp.lt.s32.totalorder %s92_s14, %s92_s14 }
  0x14   :  { %v38_v13 = vadd.f32 %v36_v11, %v28_v9 }
  0x15   :  { %v43_v14 = vsel %vm41_vm0, %v66_v4, %v37_v12  ;;  %p99_p8 = por %p98_p7, %p97_p6 }
  0x16   :  { %v45_v15 = vsel %vm39_vm1, %v27_v7, %v43_v14  ;;  %v44_v16 = vsel %vm42_vm2, %v67_v10, %v38_v13 }
  0x17   :  { %47 = vst [vmem:[#allocation5] sm:$0xff] %v45_v15  ;;  %v46_v17 = vsel %vm40_vm3, %v28_v9, %v44_v16  ;;  %p100_p9 = pnand %p99_p8, %p93_p5 }
  0x18   :  { %48 = vst [vmem:[#allocation5 + $0x8] sm:$0xff] %v46_v17 }
  0x19   :  { %103 = shalt.err (!%p100_p9)
}
  0x1a   :  { %60 = dma.vmem_to_hbm [thread:$0]  %s55_s0, 256, %s143_s1, [#allocation4], %s117_s9, %s117_s9, %s118_s10  }
  0x1b   :  { %114 = dma.done.wait [#allocation4], 256  }
  0x1c   :  { %115 = vsyncadd [#allocation4], 4294967040 }
  0x1d   :  { %64 = vsyncpa [#allocation3], 1 }
  0x1e   :  { %65 = vsyncpa [#allocation4], 1 }

</bundles_post_ra>
